<compile_context>
chip_gen: v6e
topology: v6e:2x2x1
jax: 0.10.0
libtpu: 0.0.40
codegen_flags: <defaults>
</compile_context>

<pallas_src>
import functools

import jax
import jax.numpy as jnp
from jax import lax
from jax.experimental import pallas as pl
from jax.experimental.pallas import tpu as pltpu


def _round_up(x: int, m: int) -> int:
    return ((x + m - 1) // m) * m


def _cost(B, n_in, n_out, itemsize):
    return pl.CostEstimate(
        flops=2 * B * n_in * n_out,
        transcendentals=0,
        bytes_accessed=itemsize * (B * n_in + n_out * n_in + B * n_out),
    )


# ---------------------------------------------------------------------------
# Small path: whole problem fits comfortably in VMEM -> grid-less call.
# ---------------------------------------------------------------------------
def _linear_small_kernel(x_ref, w_ref, o_ref):
    # x: (B, n_in), w: (n_out, n_in)  ->  (B, n_out); contraction on dim 1/1
    # (transposed-RHS MXU matmul, no explicit weight transpose).
    o_ref[...] = lax.dot_general(
        x_ref[...],
        w_ref[...],
        dimension_numbers=(((1,), (1,)), ((), ())),
        preferred_element_type=jnp.float32,
    ).astype(o_ref.dtype)


def _linear_small(x, w):
    B, n_in = x.shape
    n_out = w.shape[0]
    return pl.pallas_call(
        _linear_small_kernel,
        out_shape=jax.ShapeDtypeStruct((B, n_out), x.dtype),
        in_specs=[
            pl.BlockSpec(memory_space=pltpu.MemorySpace.VMEM),
            pl.BlockSpec(memory_space=pltpu.MemorySpace.VMEM),
        ],
        out_specs=pl.BlockSpec(memory_space=pltpu.MemorySpace.VMEM),
        cost_estimate=_cost(B, n_in, n_out, x.dtype.itemsize),
    )(x, w)


# ---------------------------------------------------------------------------
# Tiled path: real-sized Linear. 3-D grid over (M, N, K) with a float32
# accumulator in VMEM; weight kept in its (n_out, n_in) layout (no transpose).
# Wrapper pads every dim to a tile multiple (exact for matmul) and slices.
# ---------------------------------------------------------------------------
def _linear_tiled_kernel(x_ref, w_ref, o_ref, acc_ref):
    @pl.when(pl.program_id(2) == 0)
    def _():
        acc_ref[...] = jnp.zeros_like(acc_ref)

    acc_ref[...] += lax.dot_general(
        x_ref[...],                      # (tm, tk)
        w_ref[...],                      # (tn, tk)  -- PyTorch layout
        dimension_numbers=(((1,), (1,)), ((), ())),
        preferred_element_type=jnp.float32,
    )

    @pl.when(pl.program_id(2) == pl.num_programs(2) - 1)
    def _():
        o_ref[...] = acc_ref[...].astype(o_ref.dtype)


def _pick_tiles(B: int, n_out: int, n_in: int):
    # Multiples of (8, 128); collapse a grid axis entirely when the dim is
    # small enough (so the other operand is streamed from HBM exactly once),
    # otherwise use large 256-aligned tiles that fill the 256-wide MXU.
    tm = _round_up(B, 8) if B <= 512 else 512
    tn = _round_up(n_out, 128) if n_out <= 1024 else 512
    tk = _round_up(n_in, 128) if n_in <= 1024 else 1024
    return tm, tn, tk


def _linear_tiled(x, w):
    B, n_in = x.shape
    n_out = w.shape[0]
    tm, tn, tk = _pick_tiles(B, n_out, n_in)

    Bp, Np, Kp = _round_up(B, tm), _round_up(n_out, tn), _round_up(n_in, tk)
    if (Bp, Kp) != (B, n_in):
        x = jnp.pad(x, ((0, Bp - B), (0, Kp - n_in)))
    if (Np, Kp) != (n_out, n_in):
        w = jnp.pad(w, ((0, Np - n_out), (0, Kp - n_in)))

    grid = (Bp // tm, Np // tn, Kp // tk)
    out = pl.pallas_call(
        _linear_tiled_kernel,
        out_shape=jax.ShapeDtypeStruct((Bp, Np), x.dtype),
        grid=grid,
        in_specs=[
            pl.BlockSpec((tm, tk), lambda i, j, k: (i, k)),   # x tile
            pl.BlockSpec((tn, tk), lambda i, j, k: (j, k)),   # w tile
        ],
        out_specs=pl.BlockSpec((tm, tn), lambda i, j, k: (i, j)),
        scratch_shapes=[pltpu.VMEM((tm, tn), jnp.float32)],
        compiler_params=pltpu.CompilerParams(
            # M/N parallel -> both v7x TensorCores get work; K is the reduction.
            dimension_semantics=("parallel", "parallel", "arbitrary"),
            # Explicit so v5e's 16 MiB default scoped limit accepts the tiles;
            # worst-case tile footprint here is ~18 MiB (<< v7x's 64 MiB VMEM).
            vmem_limit_bytes=32 * 1024 * 1024,
        ),
        cost_estimate=_cost(B, n_in, n_out, x.dtype.itemsize),
    )(x, w)

    if (Bp, Np) != (B, n_out):
        out = out[:B, :n_out]
    return out


# ---------------------------------------------------------------------------
# Public wrapper: same semantics as nn.Linear(n_input, n_output, bias=False),
# i.e. out = x @ w.T with w of shape (n_output, n_input).
# ---------------------------------------------------------------------------
_SMALL_BYTES_BUDGET = 8 * 1024 * 1024   # grid-less path when x+w+out fit here


@functools.partial(jax.jit, static_argnames=("force_tiled",))
def linear_no_bias(x, w, *, force_tiled: bool = False):
    orig_shape = x.shape
    if x.ndim != 2:                      # nn.Linear supports leading batch dims
        x = x.reshape(-1, orig_shape[-1])
    B, n_in = x.shape
    n_out, n_in_w = w.shape
    assert n_in == n_in_w, "weight inner dim must match input features"

    total_bytes = x.dtype.itemsize * (B * n_in + n_out * n_in + B * n_out)
    if (not force_tiled) and total_bytes <= _SMALL_BYTES_BUDGET:
        out = _linear_small(x, w)        # one MXU pass, no pipeline overhead
    else:
        out = _linear_tiled(x, w)

    if len(orig_shape) != 2:
        out = out.reshape(*orig_shape[:-1], n_out)
    return out


if __name__ == "__main__":
    key = jax.random.PRNGKey(0)
    kx1, kw1, kx2, kw2 = jax.random.split(key, 4)

    # ---- small path (grid-less): batch=8, n_input=32, n_output=128 ----------
    batch, n_input, n_output = 8, 32, 128          # n_output=128 -> lane-dense
    x_s = jax.random.normal(kx1, (batch, n_input), dtype=jnp.float32)
    bound = 1.0 / (n_input ** 0.5)                 # nn.Linear default init bound
    w_s = jax.random.uniform(
        kw1, (n_output, n_input), dtype=jnp.float32, minval=-bound, maxval=bound
    )
    out_s = linear_no_bias(x_s, w_s)
    jax.block_until_ready(out_s)
    ref_s = x_s @ w_s.T
    assert out_s.shape == (batch, n_output)
    assert jnp.allclose(out_s, ref_s, atol=1e-5, rtol=1e-5)

    # ---- tiled path (3-D grid, padding, K-accumulation): 264 x 2304 -> 1536 --
    # Non-divisible dims exercise the pad/slice logic; grid is (1, 3, 3).
    B2, n_in2, n_out2 = 264, 2304, 1536
    x_t = jax.random.normal(kx2, (B2, n_in2), dtype=jnp.float32)
    bound2 = 1.0 / (n_in2 ** 0.5)
    w_t = jax.random.uniform(
        kw2, (n_out2, n_in2), dtype=jnp.float32, minval=-bound2, maxval=bound2
    )
    out_t = linear_no_bias(x_t, w_t, force_tiled=True)
    jax.block_until_ready(out_t)
    ref_t = x_t @ w_t.T
    assert out_t.shape == (B2, n_out2)
    assert jnp.allclose(out_t, ref_t, atol=2e-4, rtol=2e-4)

    print("KERNEL_OK")
</pallas_src>

<mosaic_0001>
module attributes {stable_mosaic.version = 11 : i64} {
  func.func @_linear_small_kernel(%arg0: memref<8x32xf32, #tpu.memory_space<vmem>>, %arg1: memref<128x32xf32, #tpu.memory_space<vmem>>, %arg2: memref<8x128xf32, #tpu.memory_space<vmem>>) attributes {dimension_semantics = [], scalar_prefetch = 0 : i64, scratch_operands = 0 : i64, tpu.core_type = #tpu.core_type<tc>} {
    %c0 = arith.constant 0 : index
    %c0_0 = arith.constant 0 : index
    %0 = vector.load %arg0[%c0, %c0_0] : memref<8x32xf32, #tpu.memory_space<vmem>>, vector<8x32xf32>
    %c0_1 = arith.constant 0 : index
    %c0_2 = arith.constant 0 : index
    %1 = vector.load %arg1[%c0_1, %c0_2] : memref<128x32xf32, #tpu.memory_space<vmem>>, vector<128x32xf32>
    %cst = arith.constant dense<0.000000e+00> : vector<8x128xf32>
    %2 = tpu.matmul %0, %1, %cst {dimension_numbers = #tpu.dot_dimension_numbers<[1], [1], [0], [0], [0, 0, 1, 0], [], []>} : vector<8x32xf32>, vector<128x32xf32>, vector<8x128xf32> -> vector<8x128xf32>
    %c0_3 = arith.constant 0 : index
    %c0_4 = arith.constant 0 : index
    %3 = vector.load %arg2[%c0_3, %c0_4] : memref<8x128xf32, #tpu.memory_space<vmem>>, vector<8x128xf32>
    tpu.vector_store %arg2[%c0_3, %c0_4], %2 {strides = array<i32>} : memref<8x128xf32, #tpu.memory_space<vmem>>, vector<8x128xf32>,
    return
  }
}

</mosaic_0001>

<bundles_post_ra>
// kernel: linear_no_bias.1
= control target key start
LH: loop header
LB: loop body
LE: loop exit
PB: predicated region body
PF: predicated region fallthrough
CT: control target
= control target key end

     0   :  { %vm29_vm0 = vcmask 261120   ;;  %v260_v1 = vmov 0.0   ;;  %vm261_vm1 = vmmov 0   ;;  %s349_s0 = inlined_call_operand.vmem [shape: f32[8,32], index: 0, kind: input, shape index: {}]   ;;  %s350_s1 = inlined_call_operand.vmem [shape: f32[128,32], index: 1, kind: input, shape index: {}]   ;;  %s351_s2 = inlined_call_operand.hbm [shape: f32[8,128], index: 2, kind: output, shape index: {}]  }
   0x1   :  { %v28_v0 = vld [vmem:[%s350_s1 + $0x78] sm:$0xff]  ;;  %200 = vmatprep.subr.mxu0 %v260_v1  ;;  %232 = vmatprep.mubr.msk.f32.mxu0 %vm261_vm1, %v260_v1  ;;  %v27_v2 = vld [vmem:[%s350_s1 + $0x70] sm:$0xff] }
   0x2   :  { %201 = vmatpush3.xpose.msk.msra.mxu0 %vm29_vm0, %v28_v0 }
   0x3   :  { %202 = vmatprep.subr.mxu0 %v260_v1 }
   0x4   :  { %7 = vsyncpa [#allocation3], 0  ;;  %v26_v3 = vld [vmem:[%s350_s1 + $0x68] sm:$0xff]  ;;  %v25_v4 = vld [vmem:[%s350_s1 + $0x60] sm:$0xff]  ;;  %s262_s15 = smov [#allocation2]  }
   0x5   :  { %v24_v5 = vld [vmem:[%s350_s1 + $0x58] sm:$0xff]  ;;  %v23_v6 = vld [vmem:[%s350_s1 + $0x50] sm:$0xff]  ;;  %v22_v7 = vld [vmem:[%s350_s1 + $0x48] sm:$0xff]  ;;  %s158_s16 = sshll.u32 %s262_s15, 4  ;;  %s159_s16 = int_to_ptr.vmem [resolvable:$true] %s158_s16 }
   0x6   :  { %203 = vmatpush3.xpose.msk.msra.mxu0 %vm29_vm0, %v27_v2  ;;  %v21_v8 = vld [vmem:[%s350_s1 + $0x40] sm:$0xff]  ;;  %v20_v9 = vld [vmem:[%s350_s1 + $0x38] sm:$0xff]  ;;  %v19_v10 = vld [vmem:[%s350_s1 + $0x30] sm:$0xff]  ;;  %s238_s17 = scalar_lea.vmem %s159_s16, 128  ;;  %p243_p1 = scmp.lt.s32.totalorder %s159_s16, %s159_s16 }
   0x7   :  { %204 = vmatprep.subr.mxu0 %v260_v1  ;;  %v18_v11 = vld [vmem:[%s350_s1 + $0x28] sm:$0xff]  ;;  %v17_v12 = vld [vmem:[%s350_s1 + $0x20] sm:$0xff]  ;;  %v16_v13 = vld [vmem:[%s350_s1 + $0x18] sm:$0xff]  ;;  %p239_p0 = scmp.ne.s32.totalorder %s159_s16, %s238_s17  ;;  %p244_p2 = scmp.lt.s32.totalorder %s238_s17, %s238_s17 }
   0x8   :  { %v15_v14 = vld [vmem:[%s350_s1 + $0x10] sm:$0xff]  ;;  %v14_v15 = vld [vmem:[%s350_s1 + $0x8] sm:$0xff]  ;;  %v13_v16 = vld [vmem:[%s350_s1] sm:$0xff] }
   0x9   :  { %v12_v17 = vld [vmem:[%s349_s0] sm:$0xff]  ;;  %p245_p3 = por %p244_p2, %p243_p1 }
   0xa   :  { %205 = vmatpush3.xpose.msk.msra.mxu0 %vm29_vm0, %v26_v3 }
   0xb   :  { %206 = vmatprep.subr.mxu0 %v260_v1  ;;  %p246_p4 = pnand %p245_p3, %p239_p0 }
   0xe   :  { %207 = vmatpush3.xpose.msk.msra.mxu0 %vm29_vm0, %v25_v4 }
   0xf   :  { %208 = vmatprep.subr.mxu0 %v260_v1 }
  0x12   :  { %209 = vmatpush3.xpose.msk.msra.mxu0 %vm29_vm0, %v24_v5 }
  0x13   :  { %210 = vmatprep.subr.mxu0 %v260_v1 }
  0x16   :  { %211 = vmatpush3.xpose.msk.msra.mxu0 %vm29_vm0, %v23_v6 }
  0x17   :  { %212 = vmatprep.subr.mxu0 %v260_v1 }
  0x1a   :  { %213 = vmatpush3.xpose.msk.msra.mxu0 %vm29_vm0, %v22_v7 }
  0x1b   :  { %214 = vmatprep.subr.mxu0 %v260_v1 }
  0x1e   :  { %215 = vmatpush3.xpose.msk.msra.mxu0 %vm29_vm0, %v21_v8 }
  0x1f   :  { %216 = vmatprep.subr.mxu0 %v260_v1 }
  0x22   :  { %217 = vmatpush3.xpose.msk.msra.mxu0 %vm29_vm0, %v20_v9 }
  0x23   :  { %218 = vmatprep.subr.mxu0 %v260_v1 }
  0x26   :  { %219 = vmatpush3.xpose.msk.msra.mxu0 %vm29_vm0, %v19_v10 }
  0x27   :  { %220 = vmatprep.subr.mxu0 %v260_v1 }
  0x2a   :  { %221 = vmatpush3.xpose.msk.msra.mxu0 %vm29_vm0, %v18_v11 }
  0x2b   :  { %222 = vmatprep.subr.mxu0 %v260_v1 }
  0x2e   :  { %223 = vmatpush3.xpose.msk.msra.mxu0 %vm29_vm0, %v17_v12 }
  0x2f   :  { %224 = vmatprep.subr.mxu0 %v260_v1 }
  0x32   :  { %225 = vmatpush3.xpose.msk.msra.mxu0 %vm29_vm0, %v16_v13 }
  0x33   :  { %226 = vmatprep.subr.mxu0 %v260_v1 }
  0x36   :  { %227 = vmatpush3.xpose.msk.msra.mxu0 %vm29_vm0, %v15_v14 }
  0x37   :  { %228 = vmatprep.subr.mxu0 %v260_v1 }
  0x3a   :  { %229 = vmatpush3.xpose.msk.msra.mxu0 %vm29_vm0, %v14_v15 }
  0x3b   :  { %230 = vmatprep.subr.mxu0 %v260_v1 }
  0x3e   :  { %231 = vmatpush3.xpose.msk.msra.mxu0 %vm29_vm0, %v13_v16 }
  0x41   :  { %233 = vmatmul.mubr.msk.f32.vlgmr.msra.gmra.mxu0 %vm29_vm0, %v12_v17 }
 0x101   :  { %v147_v18 = vpop.f32.mrf.mxu0 }
 0x102   :  { %151 = vst [vmem:[#allocation2] sm:$0xff] %v147_v18 }
 0x103   :  { %v234_v19 = vpop.f32.mrf.mxu0 }
 0x104   :  { %249 = shalt.err (!%p246_p4)
}
 0x105   :  { %161 = dma.vmem_to_hbm [thread:$0]  %s159_s16, 128, %s351_s2, [#allocation3]  }
 0x106   :  { %258 = dma.done.wait [#allocation3], 128  }
 0x107   :  { %259 = vsyncadd [#allocation3], 4294967168 }
 0x108   :  { %165 = vsyncpa [#allocation3], 1 }

</bundles_post_ra>
